<compile_context>
chip_gen: v5e
topology: v5e:2x2
jax: 0.10.0
libtpu: 0.0.40
codegen_flags: <defaults>
</compile_context>

<pallas_src>
import functools
import math

import jax
import jax.numpy as jnp
from jax import lax
from jax.experimental import pallas as pl
from jax.experimental.pallas import tpu as pltpu


def _round_up(a, b):
    return (a + b - 1) // b * b


def _detector_kernel(num_classes, x_ref, w_ref, b_ref, out_ref):
    # x_ref:   (TM, D)     input batch tile (bf16 or f32)
    # w_ref:   (D, N_pad)  fused [Wm | Wd | zero-pad] weights (same dtype as x)
    # b_ref:   (1, N_pad)  fused [bm | bd - threshold + 1 | zero-pad] bias, f32
    # out_ref: (TM, N_pad) [predictions | normalised score | pad], f32
    #
    # Single fused MXU pass (classifier + detector share the same K-depth).
    full = jnp.dot(x_ref[...], w_ref[...], preferred_element_type=jnp.float32)
    full = full + b_ref[...]                                            # (TM, N_pad)

    lane = lax.broadcasted_iota(jnp.int32, full.shape, 1)               # column index

    # prediction_max over the real class columns only (pad + detector masked out).
    pred_max = jnp.max(
        jnp.where(lane < num_classes, full, -jnp.inf), axis=1, keepdims=True)  # (TM, 1)

    # Column NC already holds (detector(x) - threshold + 1), so the normalised
    # score is just that column scaled by pred_max.  One broadcast-mul over the
    # tile (VPU) + lane-select; single unmasked lane-dense store.
    out_ref[...] = jnp.where(lane == num_classes, full * pred_max, full)


def normalised_detector_forward(x_nchw, wm, bm, wd, bd, threshold,
                                compute_dtype=jnp.bfloat16):
    """Runs model + detector + score normalisation fused in one Pallas call."""
    B = x_nchw.shape[0]
    D = math.prod(x_nchw.shape[1:])
    NC = wm.shape[1]

    itemsize = jnp.dtype(compute_dtype).itemsize

    # Batch tile: 512 is a multiple of 256 (v6e MXU) and 128 (v5e MXU); cap it so
    # the double-buffered x tile stays <= ~8 MiB (comfortable vs v7x's 64 MiB VMEM
    # and the 32 MiB default scoped limit). Small batches round to 16 rows
    # (bf16 sublane packing).
    tm_cap = max(16, (8 * 1024 * 1024 // max(D * itemsize, 1)) // 16 * 16)
    TM = min(512, tm_cap)
    if B < TM:
        TM = _round_up(max(B, 1), 16)
    B_pad = _round_up(B, TM)
    N_pad = _round_up(NC + 1, 128)   # lane-dense output width

    # Fuse detector into the classifier weights; fold (- threshold + 1) into the
    # detector bias; zero-pad to lane width.
    w_fused = jnp.concatenate([wm, wd], axis=1)                              # (D, NC+1)
    b_fused = jnp.concatenate(
        [bm.reshape(-1), bd.reshape(-1) - threshold + 1.0])                  # (NC+1,)
    w_fused = jnp.pad(w_fused, ((0, 0), (0, N_pad - (NC + 1))))
    b_fused = jnp.pad(b_fused, (0, N_pad - (NC + 1)))
    b_fused = b_fused.reshape(1, N_pad).astype(jnp.float32)

    x_flat = x_nchw.reshape(B, D)
    x_flat = jnp.pad(x_flat, ((0, B_pad - B), (0, 0)))

    # bf16 inputs/weights (halves HBM DMA bytes on v6e/v7x); f32 accumulate in-kernel.
    x_flat = x_flat.astype(compute_dtype)
    w_fused = w_fused.astype(compute_dtype)

    kernel = functools.partial(_detector_kernel, int(NC))

    bytes_accessed = (B_pad * D * itemsize          # x
                      + D * N_pad * itemsize        # fused weights
                      + N_pad * 4                   # fused bias
                      + B_pad * N_pad * 4)          # output

    # TODO(synk): for very large D (x tile + resident weights > VMEM), add a
    # K-reduction grid axis (last, "arbitrary") with a (TM, N_pad) f32 accumulator
    # scratch instead of contracting all of D in one dot; unnecessary at these sizes.
    out = pl.pallas_call(
        kernel,
        out_shape=jax.ShapeDtypeStruct((B_pad, N_pad), jnp.float32),
        grid=(B_pad // TM,),
        in_specs=[
            pl.BlockSpec((TM, D), lambda i: (i, 0)),      # x streams over batch tiles
            pl.BlockSpec((D, N_pad), lambda i: (0, 0)),   # fused weights, VMEM-resident
            pl.BlockSpec((1, N_pad), lambda i: (0, 0)),   # fused bias, VMEM-resident
        ],
        out_specs=pl.BlockSpec((TM, N_pad), lambda i: (i, 0)),
        compiler_params=pltpu.CompilerParams(
            dimension_semantics=("parallel",),            # megacore-shard batch tiles
            vmem_limit_bytes=64 * 1024 * 1024,
        ),
        cost_estimate=pl.CostEstimate(
            flops=2 * B_pad * D * N_pad,
            transcendentals=0,
            bytes_accessed=bytes_accessed,
        ),
    )(x_flat, w_fused, b_fused)

    return out[:B, :NC + 1]


def reference_forward(x_nchw, wm, bm, wd, bd, threshold):
    """Plain-JAX reference mirroring the PyTorch forward exactly (f32)."""
    B = x_nchw.shape[0]
    x_flat = x_nchw.reshape(B, -1).astype(jnp.float32)
    predictions = x_flat @ wm + bm                       # model(x)     -> (B, NC)
    scores = (x_flat @ wd)[:, 0] + bd.reshape(-1)[0]     # detector(x)  -> (B,)
    scores = scores - threshold
    prediction_max = predictions.max(axis=1)
    scores = (scores + 1.0) * prediction_max
    return jnp.concatenate([predictions, scores[:, None]], axis=1)


if __name__ == "__main__":
    # Small shapes consistent with an image classifier: B=2, C=4, H=W=16.
    B, C, H, W = 2, 4, 16, 16
    D = C * H * W
    NUM_CLASSES = 10
    THRESHOLD = 0.5

    key = jax.random.PRNGKey(0)
    kx, kwm, kbm, kwd, kbd = jax.random.split(key, 5)

    x = jax.random.normal(kx, (B, C, H, W), dtype=jnp.float32)
    # Deterministic synthetic parameters (no checkpoint load).
    wm = jax.random.normal(kwm, (D, NUM_CLASSES), dtype=jnp.float32) * 0.02
    bm = jax.random.normal(kbm, (NUM_CLASSES,), dtype=jnp.float32) * 0.01
    wd = jax.random.normal(kwd, (D, 1), dtype=jnp.float32) * 0.02
    bd = jax.random.normal(kbd, (1,), dtype=jnp.float32) * 0.01

    ref = reference_forward(x, wm, bm, wd, bd, THRESHOLD)

    # f32 compute path: tight check against the reference.
    out_f32 = normalised_detector_forward(x, wm, bm, wd, bd, THRESHOLD,
                                          compute_dtype=jnp.float32)
    out_f32 = jax.block_until_ready(out_f32)
    assert out_f32.shape == (B, NUM_CLASSES + 1), out_f32.shape
    assert jnp.allclose(out_f32, ref, atol=1e-4, rtol=1e-4), \
        float(jnp.max(jnp.abs(out_f32 - ref)))

    # Default bf16 path (memory-bound friendly on v6e/v7x): looser tolerance.
    out_bf16 = normalised_detector_forward(x, wm, bm, wd, bd, THRESHOLD)
    out_bf16 = jax.block_until_ready(out_bf16)
    assert out_bf16.shape == (B, NUM_CLASSES + 1), out_bf16.shape
    assert jnp.allclose(out_bf16, ref, atol=5e-2, rtol=5e-2), \
        float(jnp.max(jnp.abs(out_bf16 - ref)))

    print("KERNEL_OK")
</pallas_src>

<mosaic_0001>
module attributes {stable_mosaic.version = 11 : i64} {
  func.func @_detector_kernel(%arg0: i32, %arg1: memref<16x1024xf32, #tpu.memory_space<vmem>>, %arg2: memref<1024x128xf32, #tpu.memory_space<vmem>>, %arg3: memref<1x128xf32, #tpu.memory_space<vmem>>, %arg4: memref<16x128xf32, #tpu.memory_space<vmem>>) attributes {dimension_semantics = [#tpu.dimension_semantics<parallel>], iteration_bounds = array<i64: 1>, scalar_prefetch = 0 : i64, scratch_operands = 0 : i64, tpu.core_type = #tpu.core_type<tc>, window_params = [{transform_indices = @transform_0, window_bounds = array<i64: 16, 1024>}, {pipeline_mode = #tpu.pipeline_mode<synchronous>, transform_indices = @transform_1, window_bounds = array<i64: 1024, 128>}, {pipeline_mode = #tpu.pipeline_mode<synchronous>, transform_indices = @transform_2, window_bounds = array<i64: 1, 128>}, {transform_indices = @transform_3, window_bounds = array<i64: 16, 128>}]} {
    %c0 = arith.constant 0 : index
    %c0_0 = arith.constant 0 : index
    %0 = vector.load %arg1[%c0, %c0_0] : memref<16x1024xf32, #tpu.memory_space<vmem>>, vector<16x1024xf32>
    %c0_1 = arith.constant 0 : index
    %c0_2 = arith.constant 0 : index
    %1 = vector.load %arg2[%c0_1, %c0_2] : memref<1024x128xf32, #tpu.memory_space<vmem>>, vector<1024x128xf32>
    %cst = arith.constant dense<0.000000e+00> : vector<16x128xf32>
    %2 = tpu.matmul %0, %1, %cst {dimension_numbers = #tpu.dot_dimension_numbers<[1], [0], [0], [1], [0, 0, 1, 1], [], []>} : vector<16x1024xf32>, vector<1024x128xf32>, vector<16x128xf32> -> vector<16x128xf32>
    %c0_3 = arith.constant 0 : index
    %c0_4 = arith.constant 0 : index
    %3 = vector.load %arg3[%c0_3, %c0_4] : memref<1x128xf32, #tpu.memory_space<vmem>>, vector<1x128xf32>
    %4 = vector.broadcast %3 : vector<1x128xf32> to vector<16x128xf32>
    %5 = arith.addf %2, %4 : vector<16x128xf32>
    %6 = tpu.iota {dimensions = array<i32: 1>} : vector<16x128xi32>
    %c10_i32 = arith.constant 10 : i32
    %7 = vector.broadcast %c10_i32 : i32 to vector<16x128xi32>
    %8 = arith.cmpi slt, %6, %7 : vector<16x128xi32>
    %cst_5 = arith.constant 0xFF800000 : f32
    %9 = vector.broadcast %cst_5 : f32 to vector<16x128xf32>
    %10 = arith.select %8, %5, %9 : vector<16x128xi1>, vector<16x128xf32>
    %cst_6 = arith.constant dense<0xFF800000> : vector<16xf32>
    %11 = vector.multi_reduction <maximumf>, %10, %cst_6 [1] : vector<16x128xf32> to vector<16xf32>
    %12 = vector.shape_cast %11 : vector<16xf32> to vector<16x1xf32>
    %c10_i32_7 = arith.constant 10 : i32
    %13 = vector.broadcast %c10_i32_7 : i32 to vector<16x128xi32>
    %14 = arith.cmpi eq, %6, %13 : vector<16x128xi32>
    %15 = vector.broadcast %12 : vector<16x1xf32> to vector<16x128xf32>
    %16 = arith.mulf %5, %15 : vector<16x128xf32>
    %17 = arith.select %14, %16, %5 : vector<16x128xi1>, vector<16x128xf32>
    %c0_8 = arith.constant 0 : index
    %c0_9 = arith.constant 0 : index
    %18 = vector.load %arg4[%c0_8, %c0_9] : memref<16x128xf32, #tpu.memory_space<vmem>>, vector<16x128xf32>
    tpu.vector_store %arg4[%c0_8, %c0_9], %17 {strides = array<i32>} : memref<16x128xf32, #tpu.memory_space<vmem>>, vector<16x128xf32>,
    return
  }
  func.func @transform_0(%arg0: i32) -> (i32, i32) {
    %c0_i32 = arith.constant 0 : i32
    %c0_i32_0 = arith.constant 0 : i32
    return %arg0, %c0_i32 : i32, i32
  }
  func.func @transform_1(%arg0: i32) -> (i32, i32) {
    %c0_i32 = arith.constant 0 : i32
    %c0_i32_0 = arith.constant 0 : i32
    %c0_i32_1 = arith.constant 0 : i32
    return %c0_i32, %c0_i32_0 : i32, i32
  }
  func.func @transform_2(%arg0: i32) -> (i32, i32) {
    %c0_i32 = arith.constant 0 : i32
    %c0_i32_0 = arith.constant 0 : i32
    %c0_i32_1 = arith.constant 0 : i32
    return %c0_i32, %c0_i32_0 : i32, i32
  }
  func.func @transform_3(%arg0: i32) -> (i32, i32) {
    %c0_i32 = arith.constant 0 : i32
    %c0_i32_0 = arith.constant 0 : i32
    return %arg0, %c0_i32 : i32, i32
  }
}

</mosaic_0001>

<bundles_post_ra>
// kernel: tpu_custom_call.1
= control target key start
LH: loop header
LB: loop body
LE: loop exit
PB: predicated region body
PF: predicated region fallthrough
CT: control target
= control target key end

     0   :  { %8 = vsyncpa [#allocation3], 0  ;;  %s546_s0 = inlined_call_operand.hbm [shape: f32[16,1024], index: 0, kind: input, shape index: {}]   ;;  %s547_s1 = inlined_call_operand.hbm [shape: f32[1024,128], index: 1, kind: input, shape index: {}]   ;;  %s548_s2 = inlined_call_operand.vmem [shape: f32[1,128], index: 2, kind: input, shape index: {}]   ;;  %s549_s3 = inlined_call_operand.hbm [shape: f32[16,128], index: 3, kind: output, shape index: {}]  }
   0x1   :  { %9 = vsyncpa [#allocation6], 0 }
   0x2   :  { %10 = vsyncpa [#allocation4], 0  ;;  %s15_s14 = sshll.u32 %s546_s0, 4  ;;  %s501_s15 = smov [#allocation2]   ;;  %s16_s14 = int_to_ptr.hbm [resolvable:$true] %s15_s14 }
   0x3   :  { %s17_s16 = sshll.u32 %s501_s15, 4  ;;  %s28_s19 = sshll.u32 %s547_s1, 4  ;;  %s18_s16 = int_to_ptr.vmem [resolvable:$true] %s17_s16  ;;  %s29_s19 = int_to_ptr.hbm [resolvable:$true] %s28_s19 }
   0x4   :  { %s502_s20 = smov 1024   ;;  %s503_s21 = smov 64  }
   0x5   :  { %23 = dma.hbm_to_vmem [thread:$0]  %s16_s14, 2048, %s18_s16, [#allocation3], %s502_s20, %s502_s20, %s503_s21  }
   0x6   :  { %s504_s22 = smov [#allocation5]   ;;  %s505_s24 = smov 128  }
   0x7   :  { %s30_s23 = sshll.u32 %s504_s22, 4  ;;  %s506_s25 = smov 8   ;;  %s31_s23 = int_to_ptr.vmem [resolvable:$true] %s30_s23 }
   0x8   :  { %36 = dma.hbm_to_vmem [thread:$0]  %s29_s19, 16384, %s31_s23, [#allocation6], %s505_s24, %s505_s24, %s506_s25  }
   0x9   :  { %495 = dma.done.wait [#allocation3], 2048  }
   0xa   :  { %496 = vsyncadd [#allocation3], 4294965248 }
   0xb   :  { %497 = dma.done.wait [#allocation6], 16384  }
   0xc   :  { %498 = vsyncadd [#allocation6], 4294950912  ;;  %v78_v0 = vld [vmem:[#allocation5 + $0x78] sm:$0xff]  ;;  %v77_v2 = vld [vmem:[#allocation5 + $0x70] sm:$0xff]  ;;  %s401_s29 = sshll.u32 %s549_s3, 4  ;;  %s402_s29 = int_to_ptr.hbm [resolvable:$true] %s401_s29 }
   0xd   :  { %v110_v1 = vld [vmem:[#allocation5 + $0x178] sm:$0xff]  ;;  %195 = vmatpush.msra.mxu0 %v78_v0  ;;  %v109_v4 = vld [vmem:[#allocation5 + $0x170] sm:$0xff]  ;;  %v76_v6 = vld [vmem:[#allocation5 + $0x68] sm:$0xff] }
   0xe   :  { %241 = vmatpush.msra.mxu2 %v110_v1  ;;  %v94_v3 = vld [vmem:[#allocation5 + $0xf8] sm:$0xff]  ;;  %v93_v7 = vld [vmem:[#allocation5 + $0xf0] sm:$0xff]  ;;  %v108_v8 = vld [vmem:[#allocation5 + $0x168] sm:$0xff] }
   0xf   :  { %v126_v5 = vld [vmem:[#allocation5 + $0x1f8] sm:$0xff]  ;;  %218 = vmatpush.msra.mxu1 %v94_v3  ;;  %196 = vmatpush.msra.mxu0 %v77_v2  ;;  %v125_v9 = vld [vmem:[#allocation5 + $0x1f0] sm:$0xff]  ;;  %v92_v10 = vld [vmem:[#allocation5 + $0xe8] sm:$0xff] }
  0x10   :  { %264 = vmatpush.msra.mxu3 %v126_v5  ;;  %242 = vmatpush.msra.mxu2 %v109_v4  ;;  %v75_v11 = vld [vmem:[#allocation5 + $0x60] sm:$0xff]  ;;  %v124_v13 = vld [vmem:[#allocation5 + $0x1e8] sm:$0xff]  ;;  %v74_v16 = vld [vmem:[#allocation5 + $0x58] sm:$0xff] }
  0x11   :  { %219 = vmatpush.msra.mxu1 %v93_v7  ;;  %v107_v12 = vld [vmem:[#allocation5 + $0x160] sm:$0xff]  ;;  %197 = vmatpush.msra.mxu0 %v76_v6  ;;  %v106_v17 = vld [vmem:[#allocation5 + $0x158] sm:$0xff]  ;;  %v73_v20 = vld [vmem:[#allocation5 + $0x50] sm:$0xff] }
  0x12   :  { %265 = vmatpush.msra.mxu3 %v125_v9  ;;  %243 = vmatpush.msra.mxu2 %v108_v8  ;;  %v91_v14 = vld [vmem:[#allocation5 + $0xe0] sm:$0xff]  ;;  %v90_v18 = vld [vmem:[#allocation5 + $0xd8] sm:$0xff]  ;;  %v105_v21 = vld [vmem:[#allocation5 + $0x150] sm:$0xff] }
  0x13   :  { %v123_v15 = vld [vmem:[#allocation5 + $0x1e0] sm:$0xff]  ;;  %220 = vmatpush.msra.mxu1 %v92_v10  ;;  %198 = vmatpush.msra.mxu0 %v75_v11  ;;  %v122_v19 = vld [vmem:[#allocation5 + $0x1d8] sm:$0xff]  ;;  %v89_v22 = vld [vmem:[#allocation5 + $0xd0] sm:$0xff] }
  0x14   :  { %266 = vmatpush.msra.mxu3 %v124_v13  ;;  %244 = vmatpush.msra.mxu2 %v107_v12  ;;  %v121_v23 = vld [vmem:[#allocation5 + $0x1d0] sm:$0xff]  ;;  %v72_v24 = vld [vmem:[#allocation5 + $0x48] sm:$0xff]  ;;  %v71_v28 = vld [vmem:[#allocation5 + $0x40] sm:$0xff] }
  0x15   :  { %221 = vmatpush.msra.mxu1 %v91_v14  ;;  %199 = vmatpush.msra.mxu0 %v74_v16  ;;  %v104_v25 = vld [vmem:[#allocation5 + $0x148] sm:$0xff]  ;;  %v103_v29 = vld [vmem:[#allocation5 + $0x140] sm:$0xff]  ;;  %v70_v32 = vld [vmem:[#allocation5 + $0x38] sm:$0xff] }
  0x16   :  { %267 = vmatpush.msra.mxu3 %v123_v15  ;;  %245 = vmatpush.msra.mxu2 %v106_v17  ;;  %v88_v26 = vld [vmem:[#allocation5 + $0xc8] sm:$0xff]  ;;  %v87_v30 = vld [vmem:[#allocation5 + $0xc0] sm:$0xff]  ;;  %v102_v33 = vld [vmem:[#allocation5 + $0x138] sm:$0xff] }
  0x17   :  { %222 = vmatpush.msra.mxu1 %v90_v18  ;;  %200 = vmatpush.msra.mxu0 %v73_v20  ;;  %v120_v27 = vld [vmem:[#allocation5 + $0x1c8] sm:$0xff]  ;;  %v119_v31 = vld [vmem:[#allocation5 + $0x1c0] sm:$0xff]  ;;  %v86_v34 = vld [vmem:[#allocation5 + $0xb8] sm:$0xff] }
  0x18   :  { %268 = vmatpush.msra.mxu3 %v122_v19  ;;  %246 = vmatpush.msra.mxu2 %v105_v21  ;;  %v118_v35 = vld [vmem:[#allocation5 + $0x1b8] sm:$0xff]  ;;  %v69_v36 = vld [vmem:[#allocation5 + $0x30] sm:$0xff]  ;;  %v68_v40 = vld [vmem:[#allocation5 + $0x28] sm:$0xff] }
  0x19   :  { %223 = vmatpush.msra.mxu1 %v89_v22  ;;  %201 = vmatpush.msra.mxu0 %v72_v24  ;;  %v101_v37 = vld [vmem:[#allocation5 + $0x130] sm:$0xff]  ;;  %v100_v41 = vld [vmem:[#allocation5 + $0x128] sm:$0xff]  ;;  %v67_v44 = vld [vmem:[#allocation5 + $0x20] sm:$0xff] }
  0x1a   :  { %269 = vmatpush.msra.mxu3 %v121_v23  ;;  %247 = vmatpush.msra.mxu2 %v104_v25  ;;  %v85_v38 = vld [vmem:[#allocation5 + $0xb0] sm:$0xff]  ;;  %v84_v42 = vld [vmem:[#allocation5 + $0xa8] sm:$0xff]  ;;  %v99_v45 = vld [vmem:[#allocation5 + $0x120] sm:$0xff] }
  0x1b   :  { %224 = vmatpush.msra.mxu1 %v88_v26  ;;  %202 = vmatpush.msra.mxu0 %v71_v28  ;;  %v117_v39 = vld [vmem:[#allocation5 + $0x1b0] sm:$0xff]  ;;  %v116_v43 = vld [vmem:[#allocation5 + $0x1a8] sm:$0xff]  ;;  %v83_v46 = vld [vmem:[#allocation5 + $0xa0] sm:$0xff] }
  0x1c   :  { %270 = vmatpush.msra.mxu3 %v120_v27  ;;  %248 = vmatpush.msra.mxu2 %v103_v29  ;;  %v115_v47 = vld [vmem:[#allocation5 + $0x1a0] sm:$0xff]  ;;  %v66_v48 = vld [vmem:[#allocation5 + $0x18] sm:$0xff]  ;;  %v65_v52 = vld [vmem:[#allocation5 + $0x10] sm:$0xff] }
  0x1d   :  { %225 = vmatpush.msra.mxu1 %v87_v30  ;;  %203 = vmatpush.msra.mxu0 %v70_v32  ;;  %v98_v49 = vld [vmem:[#allocation5 + $0x118] sm:$0xff]  ;;  %v97_v53 = vld [vmem:[#allocation5 + $0x110] sm:$0xff]  ;;  %v64_v56 = vld [vmem:[#allocation5 + $0x8] sm:$0xff] }
  0x1e   :  { %271 = vmatpush.msra.mxu3 %v119_v31  ;;  %249 = vmatpush.msra.mxu2 %v102_v33  ;;  %v82_v50 = vld [vmem:[#allocation5 + $0x98] sm:$0xff]  ;;  %v81_v54 = vld [vmem:[#allocation5 + $0x90] sm:$0xff]  ;;  %v96_v57 = vld [vmem:[#allocation5 + $0x108] sm:$0xff] }
  0x1f   :  { %226 = vmatpush.msra.mxu1 %v86_v34  ;;  %204 = vmatpush.msra.mxu0 %v69_v36  ;;  %v114_v51 = vld [vmem:[#allocation5 + $0x198] sm:$0xff]  ;;  %v113_v55 = vld [vmem:[#allocation5 + $0x190] sm:$0xff]  ;;  %v80_v58 = vld [vmem:[#allocation5 + $0x88] sm:$0xff] }
  0x20   :  { %272 = vmatpush.msra.mxu3 %v118_v35  ;;  %250 = vmatpush.msra.mxu2 %v101_v37  ;;  %v112_v59 = vld [vmem:[#allocation5 + $0x188] sm:$0xff]  ;;  %v63_v60 = vld [vmem:[#allocation5] sm:$0xff]  ;;  %v142_v62 = vld [vmem:[#allocation5 + $0x278] sm:$0xff] }
  0x21   :  { %227 = vmatpush.msra.mxu1 %v85_v38  ;;  %205 = vmatpush.msra.mxu0 %v68_v40  ;;  %v95_v61 = vld [vmem:[#allocation5 + $0x100] sm:$0xff]  ;;  %v174_v63 = vld [vmem:[#allocation5 + $0x378] sm:$0xff]  ;;  %v141_v2 = vld [vmem:[#allocation5 + $0x270] sm:$0xff] }
  0x22   :  { %273 = vmatpush.msra.mxu3 %v117_v39  ;;  %251 = vmatpush.msra.mxu2 %v100_v41  ;;  %v79_v0 = vld [vmem:[#allocation5 + $0x80] sm:$0xff]  ;;  %v158_v3 = vld [vmem:[#allocation5 + $0x2f8] sm:$0xff]  ;;  %v173_v4 = vld [vmem:[#allocation5 + $0x370] sm:$0xff] }
  0x23   :  { %228 = vmatpush.msra.mxu1 %v84_v42  ;;  %206 = vmatpush.msra.mxu0 %v67_v44  ;;  %v111_v1 = vld [vmem:[#allocation5 + $0x180] sm:$0xff]  ;;  %v190_v5 = vld [vmem:[#allocation5 + $0x3f8] sm:$0xff]  ;;  %v140_v6 = vld [vmem:[#allocation5 + $0x268] sm:$0xff] }
  0x24   :  { %274 = vmatpush.msra.mxu3 %v116_v43  ;;  %252 = vmatpush.msra.mxu2 %v99_v45  ;;  %v157_v7 = vld [vmem:[#allocation5 + $0x2f0] sm:$0xff]  ;;  %v172_v8 = vld [vmem:[#allocation5 + $0x368] sm:$0xff]  ;;  %v139_v10 = vld [vmem:[#allocation5 + $0x260] sm:$0xff] }
  0x25   :  { %229 = vmatpush.msra.mxu1 %v83_v46  ;;  %207 = vmatpush.msra.mxu0 %v66_v48  ;;  %v189_v9 = vld [vmem:[#allocation5 + $0x3f0] sm:$0xff]  ;;  %v156_v11 = vld [vmem:[#allocation5 + $0x2e8] sm:$0xff]  ;;  %v171_v12 = vld [vmem:[#allocation5 + $0x360] sm:$0xff] }
  0x26   :  { %275 = vmatpush.msra.mxu3 %v115_v47  ;;  %253 = vmatpush.msra.mxu2 %v98_v49  ;;  %v188_v13 = vld [vmem:[#allocation5 + $0x3e8] sm:$0xff]  ;;  %v138_v14 = vld [vmem:[#allocation5 + $0x258] sm:$0xff]  ;;  %v155_v15 = vld [vmem:[#allocation5 + $0x2e0] sm:$0xff] }
  0x27   :  { %230 = vmatpush.msra.mxu1 %v82_v50  ;;  %208 = vmatpush.msra.mxu0 %v65_v52  ;;  %v170_v16 = vld [vmem:[#allocation5 + $0x358] sm:$0xff]  ;;  %v187_v17 = vld [vmem:[#allocation5 + $0x3e0] sm:$0xff]  ;;  %v137_v18 = vld [vmem:[#allocation5 + $0x250] sm:$0xff] }
  0x28   :  { %276 = vmatpush.msra.mxu3 %v114_v51  ;;  %254 = vmatpush.msra.mxu2 %v97_v53  ;;  %v154_v19 = vld [vmem:[#allocation5 + $0x2d8] sm:$0xff]  ;;  %v169_v20 = vld [vmem:[#allocation5 + $0x350] sm:$0xff]  ;;  %v136_v22 = vld [vmem:[#allocation5 + $0x248] sm:$0xff] }
  0x29   :  { %231 = vmatpush.msra.mxu1 %v81_v54  ;;  %209 = vmatpush.msra.mxu0 %v64_v56  ;;  %v186_v21 = vld [vmem:[#allocation5 + $0x3d8] sm:$0xff]  ;;  %v153_v23 = vld [vmem:[#allocation5 + $0x2d0] sm:$0xff]  ;;  %v168_v24 = vld [vmem:[#allocation5 + $0x348] sm:$0xff] }
  0x2a   :  { %277 = vmatpush.msra.mxu3 %v113_v55  ;;  %255 = vmatpush.msra.mxu2 %v96_v57  ;;  %v185_v25 = vld [vmem:[#allocation5 + $0x3d0] sm:$0xff]  ;;  %v135_v26 = vld [vmem:[#allocation5 + $0x240] sm:$0xff]  ;;  %v152_v27 = vld [vmem:[#allocation5 + $0x2c8] sm:$0xff] }
  0x2b   :  { %232 = vmatpush.msra.mxu1 %v80_v58  ;;  %210 = vmatpush.msra.mxu0 %v63_v60  ;;  %v167_v28 = vld [vmem:[#allocation5 + $0x340] sm:$0xff]  ;;  %v184_v29 = vld [vmem:[#allocation5 + $0x3c8] sm:$0xff]  ;;  %v49_v31 = vld [vmem:[#allocation2 + $0x10] sm:$0xff] }
  0x2c   :  { %278 = vmatpush.msra.mxu3 %v112_v59  ;;  %256 = vmatpush.msra.mxu2 %v95_v61  ;;  %v47_v30 = vld [vmem:[#allocation2] sm:$0xff]  ;;  %v134_v32 = vld [vmem:[#allocation5 + $0x238] sm:$0xff]  ;;  %v48_v36 = vld [vmem:[#allocation2 + $0x8] sm:$0xff] }
  0x2d   :  { %287 = vmatpush.msrb.mxu0 %v142_v62  ;;  %233 = vmatpush.msra.mxu1 %v79_v0  ;;  %v151_v33 = vld [vmem:[#allocation5 + $0x2c0] sm:$0xff]  ;;  %v166_v34 = vld [vmem:[#allocation5 + $0x338] sm:$0xff]  ;;  %v133_v38 = vld [vmem:[#allocation5 + $0x230] sm:$0xff] }
  0x2e   :  { %333 = vmatpush.msrb.mxu2 %v174_v63  ;;  %279 = vmatpush.msra.mxu3 %v111_v1  ;;  %v183_v35 = vld [vmem:[#allocation5 + $0x3c0] sm:$0xff]  ;;  %v50_v37 = vld [vmem:[#allocation2 + $0x18] sm:$0xff]  ;;  %v165_v40 = vld [vmem:[#allocation5 + $0x330] sm:$0xff] }
  0x2f   :  { %288 = vmatpush.msrb.mxu0 %v141_v2  ;;  %310 = vmatpush.msrb.mxu1 %v158_v3  ;;  %v150_v39 = vld [vmem:[#allocation5 + $0x2b8] sm:$0xff]  ;;  %v132_v42 = vld [vmem:[#allocation5 + $0x228] sm:$0xff]  ;;  %v149_v43 = vld [vmem:[#allocation5 + $0x2b0] sm:$0xff] }
  0x30   :  { %334 = vmatpush.msrb.mxu2 %v173_v4  ;;  %356 = vmatpush.msrb.mxu3 %v190_v5  ;;  %v182_v41 = vld [vmem:[#allocation5 + $0x3b8] sm:$0xff]  ;;  %v164_v44 = vld [vmem:[#allocation5 + $0x328] sm:$0xff]  ;;  %v181_v45 = vld [vmem:[#allocation5 + $0x3b0] sm:$0xff] }
  0x31   :  { %289 = vmatpush.msrb.mxu0 %v140_v6  ;;  %311 = vmatpush.msrb.mxu1 %v157_v7  ;;  %v131_v46 = vld [vmem:[#allocation5 + $0x220] sm:$0xff]  ;;  %v148_v47 = vld [vmem:[#allocation5 + $0x2a8] sm:$0xff]  ;;  %v57_v51 = vld [vmem:[#allocation2 + $0x50] sm:$0xff] }
  0x32   :  { %335 = vmatpush.msrb.mxu2 %v172_v8  ;;  %357 = vmatpush.msrb.mxu3 %v189_v9  ;;  %v163_v48 = vld [vmem:[#allocation5 + $0x320] sm:$0xff]  ;;  %v180_v49 = vld [vmem:[#allocation5 + $0x3a8] sm:$0xff]  ;;  %v130_v52 = vld [vmem:[#allocation5 + $0x218] sm:$0xff] }
  0x33   :  { %290 = vmatpush.msrb.mxu0 %v139_v10  ;;  %312 = vmatpush.msrb.mxu1 %v156_v11  ;;  %v55_v50 = vld [vmem:[#allocation2 + $0x40] sm:$0xff]  ;;  %v162_v54 = vld [vmem:[#allocation5 + $0x318] sm:$0xff]  ;;  %v56_v56 = vld [vmem:[#allocation2 + $0x48] sm:$0xff] }
  0x34   :  { %336 = vmatpush.msrb.mxu2 %v171_v12  ;;  %358 = vmatpush.msrb.mxu3 %v188_v13  ;;  %v147_v53 = vld [vmem:[#allocation5 + $0x2a0] sm:$0xff]  ;;  %v58_v57 = vld [vmem:[#allocation2 + $0x58] sm:$0xff]  ;;  %v129_v58 = vld [vmem:[#allocation5 + $0x210] sm:$0xff] }
  0x35   :  { %291 = vmatpush.msrb.mxu0 %v138_v14  ;;  %313 = vmatpush.msrb.mxu1 %v155_v15  ;;  %v179_v55 = vld [vmem:[#allocation5 + $0x3a0] sm:$0xff]  ;;  %v146_v59 = vld [vmem:[#allocation5 + $0x298] sm:$0xff]  ;;  %v161_v60 = vld [vmem:[#allocation5 + $0x310] sm:$0xff] }
  0x36   :  { %337 = vmatpush.msrb.mxu2 %v170_v16  ;;  %359 = vmatpush.msrb.mxu3 %v187_v17  ;;  %v178_v61 = vld [vmem:[#allocation5 + $0x398] sm:$0xff]  ;;  %v128_v62 = vld [vmem:[#allocation5 + $0x208] sm:$0xff]  ;;  %v145_v63 = vld [vmem:[#allocation5 + $0x290] sm:$0xff] }
  0x37   :  { %292 = vmatpush.msrb.mxu0 %v137_v18  ;;  %314 = vmatpush.msrb.mxu1 %v154_v19  ;;  %v160_v0 = vld [vmem:[#allocation5 + $0x308] sm:$0xff]  ;;  %v177_v1 = vld [vmem:[#allocation5 + $0x390] sm:$0xff]  ;;  %v127_v2 = vld [vmem:[#allocation5 + $0x200] sm:$0xff] }
  0x38   :  { %338 = vmatpush.msrb.mxu2 %v169_v20  ;;  %360 = vmatpush.msrb.mxu3 %v186_v21  ;;  %v144_v3 = vld [vmem:[#allocation5 + $0x288] sm:$0xff]  ;;  %v159_v4 = vld [vmem:[#allocation5 + $0x300] sm:$0xff]  ;;  %v53_v7 = vld [vmem:[#allocation2 + $0x30] sm:$0xff] }
  0x39   :  { %293 = vmatpush.msrb.mxu0 %v136_v22  ;;  %315 = vmatpush.msrb.mxu1 %v153_v23  ;;  %v176_v5 = vld [vmem:[#allocation5 + $0x388] sm:$0xff]  ;;  %v51_v6 = vld [vmem:[#allocation2 + $0x20] sm:$0xff]  ;;  %v54_v11 = vld [vmem:[#allocation2 + $0x38] sm:$0xff] }
  0x3a   :  { %339 = vmatpush.msrb.mxu2 %v168_v24  ;;  %361 = vmatpush.msrb.mxu3 %v185_v25  ;;  %v143_v8 = vld [vmem:[#allocation5 + $0x280] sm:$0xff]  ;;  %v52_v10 = vld [vmem:[#allocation2 + $0x28] sm:$0xff]  ;;  %v61_v13 = vld [vmem:[#allocation2 + $0x70] sm:$0xff] }
  0x3b   :  { %294 = vmatpush.msrb.mxu0 %v135_v26  ;;  %316 = vmatpush.msrb.mxu1 %v152_v27  ;;  %v175_v9 = vld [vmem:[#allocation5 + $0x380] sm:$0xff]  ;;  %v60_v14 = vld [vmem:[#allocation2 + $0x68] sm:$0xff]  ;;  %v62_v15 = vld [vmem:[#allocation2 + $0x78] sm:$0xff] }
  0x3c   :  { %340 = vmatpush.msrb.mxu2 %v167_v28  ;;  %362 = vmatpush.msrb.mxu3 %v184_v29  ;;  %v59_v12 = vld [vmem:[#allocation2 + $0x60] sm:$0xff] }
  0x3d   :  { %211 = vmatmul.f32.vlgmr.msra.gmra.mxu0 %v47_v30  ;;  %257 = vmatmul.f32.vlgmr.msra.gmra.mxu2 %v49_v31  ;;  %v422_v17 = vld [vmem:[%s548_s2] ss:$0 sm:$0xff]  ;;  %s507_s2 = smov [#allocation7]  }
  0x3e   :  { %295 = vmatpush.msrb.mxu0 %v134_v32  ;;  %317 = vmatpush.msrb.mxu1 %v151_v33  ;;  %v379_v32 = vlaneseq  ;;  %s399_s26 = sshll.u32 %s507_s2, 4  ;;  %s400_s26 = int_to_ptr.vmem [resolvable:$true] %s399_s26 }
  0x3f   :  { %341 = vmatpush.msrb.mxu2 %v166_v34  ;;  %363 = vmatpush.msrb.mxu3 %v183_v35 }
  0x40   :  { %234 = vmatmul.f32.vlgmr.msra.gmra.mxu1 %v48_v36  ;;  %280 = vmatmul.f32.vlgmr.msra.gmra.mxu3 %v50_v37  ;;  %v380_v36 = vand.u32 127, %v379_v32 }
  0x41   :  { %296 = vmatpush.msrb.mxu0 %v133_v38  ;;  %318 = vmatpush.msrb.mxu1 %v150_v39 }
  0x42   :  { %342 = vmatpush.msrb.mxu2 %v165_v40  ;;  %364 = vmatpush.msrb.mxu3 %v182_v41  ;;  %vm381_vm0 = vcmp.lt.s32.totalorder %v380_v36, 10  ;;  %vm388_vm1 = vcmp.eq.s32.totalorder %v380_v36, 10 }
  0x43   :  { %297 = vmatpush.msrb.mxu0 %v132_v42  ;;  %319 = vmatpush.msrb.mxu1 %v149_v43 }
  0x44   :  { %343 = vmatpush.msrb.mxu2 %v164_v44  ;;  %365 = vmatpush.msrb.mxu3 %v181_v45 }
  0x45   :  { %298 = vmatpush.msrb.mxu0 %v131_v46  ;;  %320 = vmatpush.msrb.mxu1 %v148_v47 }
  0x46   :  { %344 = vmatpush.msrb.mxu2 %v163_v48  ;;  %366 = vmatpush.msrb.mxu3 %v180_v49 }
  0x47   :  { %214 = vmatmul.f32.gmra.mxu0 %v55_v50  ;;  %260 = vmatmul.f32.gmra.mxu2 %v57_v51 }
  0x48   :  { %299 = vmatpush.msrb.mxu0 %v130_v52  ;;  %321 = vmatpush.msrb.mxu1 %v147_v53 }
  0x49   :  { %345 = vmatpush.msrb.mxu2 %v162_v54  ;;  %367 = vmatpush.msrb.mxu3 %v179_v55 }
  0x4a   :  { %237 = vmatmul.f32.gmra.mxu1 %v56_v56  ;;  %283 = vmatmul.f32.gmra.mxu3 %v58_v57 }
  0x4b   :  { %300 = vmatpush.msrb.mxu0 %v129_v58  ;;  %322 = vmatpush.msrb.mxu1 %v146_v59 }
  0x4c   :  { %346 = vmatpush.msrb.mxu2 %v161_v60  ;;  %368 = vmatpush.msrb.mxu3 %v178_v61 }
  0x4d   :  { %301 = vmatpush.msrb.mxu0 %v128_v62  ;;  %323 = vmatpush.msrb.mxu1 %v145_v63 }
  0x4e   :  { %347 = vmatpush.msrb.mxu2 %v160_v0  ;;  %369 = vmatpush.msrb.mxu3 %v177_v1 }
  0x4f   :  { %302 = vmatpush.msrb.mxu0 %v127_v2  ;;  %324 = vmatpush.msrb.mxu1 %v144_v3 }
  0x50   :  { %348 = vmatpush.msrb.mxu2 %v159_v4  ;;  %370 = vmatpush.msrb.mxu3 %v176_v5 }
  0x51   :  { %303 = vmatmul.f32.vlgmr.msrb.gmra.mxu0 %v51_v6  ;;  %349 = vmatmul.f32.vlgmr.msrb.gmra.mxu2 %v53_v7 }
  0x52   :  { %325 = vmatpush.msrb.mxu1 %v143_v8  ;;  %371 = vmatpush.msrb.mxu3 %v175_v9 }
  0x53   :  { %326 = vmatmul.f32.vlgmr.msrb.gmra.mxu1 %v52_v10  ;;  %372 = vmatmul.f32.vlgmr.msrb.gmra.mxu3 %v54_v11 }
  0x59   :  { %306 = vmatmul.f32.gmra.mxu0 %v59_v12  ;;  %352 = vmatmul.f32.gmra.mxu2 %v61_v13 }
  0x5b   :  { %329 = vmatmul.f32.gmra.mxu1 %v60_v14  ;;  %375 = vmatmul.f32.gmra.mxu3 %v62_v15 }
  0xba   :  { %v212_v16 = vpop.f32.mrf.mxu0 }
  0xbb   :  { %v213_v20 = vadd.f32 %v422_v17, %v212_v16 }
  0xbd   :  { %v235_v18 = vpop.f32.mrf.mxu1 }
  0xbe   :  { %v236_v23 = vadd.f32 %v235_v18, %v213_v20 }
  0xc0   :  { %v258_v19 = vpop.f32.mrf.mxu2 }
  0xc1   :  { %v259_v25 = vadd.f32 %v258_v19, %v236_v23 }
  0xc3   :  { %v281_v21 = vpop.f32.mrf.mxu3 }
  0xc4   :  { %v215_v22 = vpop.f32.mrf.mxu0  ;;  %v282_v28 = vadd.f32 %v281_v21, %v259_v25 }
  0xc5   :  { %v216_v26 = vadd.f32 %v422_v17, %v215_v22 }
  0xc7   :  { %v238_v24 = vpop.f32.mrf.mxu1 }
  0xc8   :  { %v239_v29 = vadd.f32 %v238_v24, %v216_v26 }
  0xca   :  { %v261_v27 = vpop.f32.mrf.mxu2 }
  0xcb   :  { %v262_v35 = vadd.f32 %v261_v27, %v239_v29 }
  0xcd   :  { %v284_v30 = vpop.f32.mrf.mxu3 }
  0xce   :  { %v304_v31 = vpop.f32.mrf.mxu0  ;;  %v285_v39 = vadd.f32 %v284_v30, %v262_v35 }
  0xcf   :  { %v305_v33 = vadd.f32 %v304_v31, %v282_v28 }
  0xd0   :  { %v327_v34 = vpop.f32.mrf.mxu1 }
  0xd1   :  { %v328_v37 = vadd.f32 %v327_v34, %v305_v33 }
  0xd4   :  { %v350_v38 = vpop.f32.mrf.mxu2 }
  0xd5   :  { %v351_v40 = vadd.f32 %v350_v38, %v328_v37 }
  0xd6   :  { %v307_v41 = vpop.f32.mrf.mxu0  ;;  %v373_v42 = vpop.f32.mrf.mxu3 }
  0xd7   :  { %v308_v43 = vadd.f32 %v307_v41, %v285_v39  ;;  %v374_v44 = vadd.f32 %v373_v42, %v351_v40 }
  0xd8   :  { %v330_v45 = vpop.f32.mrf.mxu1 }
  0xd9   :  { %v382_v46 = vsel %vm381_vm0, %v374_v44, -inf  ;;  %v331_v47 = vadd.f32 %v330_v45, %v308_v43 }
  0xda   :  { %384 = vmax.xlane.f32.xlu0 %v382_v46 }
  0xdc   :  { %v353_v48 = vpop.f32.mrf.mxu2 }
  0xdd   :  { %v354_v49 = vadd.f32 %v353_v48, %v331_v47 }
  0xde   :  { %v376_v50 = vpop.f32.mrf.mxu3 }
  0xdf   :  { %v377_v51 = vadd.f32 %v376_v50, %v354_v49 }
  0xe1   :  { %v383_v52 = vsel %vm381_vm0, %v377_v51, -inf }
  0xe2   :  { %386 = vmax.xlane.f32.xlu0 %v383_v52 }
 0x14d   :  { %v385_v53 = vpop.xlane.xlu0 %384 }
 0x14e   :  { %v389_v54 = vmul.f32 %v385_v53, %v374_v44 }
 0x150   :  { %v391_v55 = vsel %vm388_vm1, %v389_v54, %v374_v44 }
 0x151   :  { %393 = vst [vmem:[#allocation7] sm:$0xff] %v391_v55 }
 0x155   :  { %v387_v56 = vpop.xlane.xlu0 %386 }
 0x156   :  { %v390_v57 = vmul.f32 %v387_v56, %v377_v51 }
 0x158   :  { %v392_v58 = vsel %vm388_vm1, %v390_v57, %v377_v51 }
 0x159   :  { %394 = vst [vmem:[#allocation7 + $0x8] sm:$0xff] %v392_v58 }
 0x15a   :  { %407 = dma.vmem_to_hbm [thread:$0]  %s400_s26, 256, %s402_s29, [#allocation4], %s505_s24, %s505_s24, %s506_s25  }
 0x15b   :  { %499 = dma.done.wait [#allocation4], 256  }
 0x15c   :  { %500 = vsyncadd [#allocation4], 4294967040 }
 0x15d   :  { %412 = vsyncpa [#allocation3], 1 }
 0x15e   :  { %413 = vsyncpa [#allocation6], 1 }
 0x15f   :  { %414 = vsyncpa [#allocation4], 1 }

</bundles_post_ra>
